<compile_context>
chip_gen: v7x
topology: tpu7x:2x2x1
jax: 0.10.0
libtpu: 0.0.40
codegen_flags: <defaults>
</compile_context>

<pallas_src>
import functools

import jax
import jax.numpy as jnp
from jax import lax
from jax.experimental import pallas as pl
from jax.experimental.pallas import tpu as pltpu


def _pick_seq_tile(s):
    """Largest convenient sublane-aligned tile that divides S."""
    for t in (512, 256, 128, 64, 32, 16, 8):
        if s % t == 0:
            return t
    return s  # small/ragged sequence: a single full-length tile


def _bert_embedding_kernel(type_vocab_size, tile_s, hidden,
                           ids_smem,        # (B, S) int32      SMEM (scalar prefetch)
                           tok_hbm,         # (V, H)             HBM (pl.ANY)
                           tt_ref,          # (tile_s, 1) int32  VMEM
                           type_tab_ref,    # (type_vocab, H)    VMEM
                           pos_ref,         # (tile_s, H)        VMEM (contiguous slice)
                           gamma_ref,       # (1, H)             VMEM
                           beta_ref,        # (1, H)             VMEM
                           out_ref,         # (tile_s, H)        VMEM
                           gather_buf,      # (tile_s, H)        VMEM scratch
                           gather_sem):     # (tile_s,)          DMA semaphores
    b = pl.program_id(0)
    si = pl.program_id(1)
    base = si * tile_s

    # ---- Token embedding: DMA row-gather from HBM (issue all, then wait all) ----
    @pl.loop(0, tile_s)
    def _(r):
        tok_id = ids_smem[b, base + r]
        pltpu.make_async_copy(
            tok_hbm.at[pl.ds(tok_id, 1), :],
            gather_buf.at[pl.ds(r, 1), :],
            gather_sem.at[r],
        ).start()

    @pl.loop(0, tile_s)
    def _(r):
        pltpu.make_async_copy(
            tok_hbm.at[pl.ds(0, 1), :],
            gather_buf.at[pl.ds(r, 1), :],
            gather_sem.at[r],
        ).wait()

    tok_emb = gather_buf[...].astype(jnp.float32)                   # (tile_s, H)

    # ---- Token-type embedding: VPU select over the tiny resident table ----
    tt = tt_ref[...]                                                # (tile_s, 1) int32
    type_emb = jnp.zeros((tile_s, hidden), jnp.float32)
    for t_idx in range(type_vocab_size):                            # static unroll (tiny)
        row = type_tab_ref[pl.ds(t_idx, 1), :].astype(jnp.float32)  # (1, H)
        type_emb = jnp.where(tt == t_idx, row, type_emb)

    # ---- Position embedding: contiguous slice already delivered by BlockSpec ----
    x = tok_emb + type_emb + pos_ref[...].astype(jnp.float32)       # (tile_s, H)

    # ---- LayerNorm over hidden dim (single pass, f32 stats, eps=1e-5) ----
    inv_h = jnp.float32(1.0 / hidden)
    s1 = jnp.sum(x, axis=-1, keepdims=True)
    s2 = jnp.sum(x * x, axis=-1, keepdims=True)
    mean = s1 * inv_h
    var = s2 * inv_h - mean * mean
    x_hat = (x - mean) * lax.rsqrt(var + jnp.float32(1e-5))
    y = x_hat * gamma_ref[...] + beta_ref[...]

    # Dropout: identity in eval mode.
    out_ref[...] = y.astype(out_ref.dtype)


def bert_embedding_forward(input_ids, token_type_ids, params):
    """input_ids, token_type_ids: (B, S) int -> (B, S, H) float32."""
    b, s = input_ids.shape
    tok_tab = params["token_embedding"]
    type_tab = params["token_type_embedding"]
    pos_tab = params["pos_embedding"]
    h = tok_tab.shape[1]
    type_vocab = type_tab.shape[0]

    tile_s = _pick_seq_tile(s)
    n_s_tiles = s // tile_s

    ids = input_ids.astype(jnp.int32)                      # SMEM scalar prefetch
    tt3 = token_type_ids.astype(jnp.int32).reshape(b, s, 1)
    pos_slice = pos_tab[:s]                                # contiguous rows, no gather
    gamma = params["ln_gamma"].reshape(1, h).astype(jnp.float32)
    beta = params["ln_beta"].reshape(1, h).astype(jnp.float32)

    kernel = functools.partial(_bert_embedding_kernel, type_vocab, tile_s, h)

    grid_spec = pltpu.PrefetchScalarGridSpec(
        num_scalar_prefetch=1,
        grid=(b, n_s_tiles),
        in_specs=[
            # Token table: stays in HBM; rows are DMA-gathered in-kernel.
            pl.BlockSpec(memory_space=pl.ANY),
            # Token-type ids, one seq tile per grid step.
            pl.BlockSpec((None, tile_s, 1), lambda bi, si, ids_ref: (bi, si, 0)),
            # Tiny type table, fully resident.
            pl.BlockSpec((type_vocab, h), lambda bi, si, ids_ref: (0, 0)),
            # Position rows for this seq tile (contiguous slice).
            pl.BlockSpec((tile_s, h), lambda bi, si, ids_ref: (si, 0)),
            # LayerNorm affine params.
            pl.BlockSpec((1, h), lambda bi, si, ids_ref: (0, 0)),
            pl.BlockSpec((1, h), lambda bi, si, ids_ref: (0, 0)),
        ],
        out_specs=pl.BlockSpec((None, tile_s, h), lambda bi, si, ids_ref: (bi, si, 0)),
        scratch_shapes=[
            pltpu.VMEM((tile_s, h), tok_tab.dtype),
            pltpu.SemaphoreType.DMA((tile_s,)),
        ],
    )

    return pl.pallas_call(
        kernel,
        out_shape=jax.ShapeDtypeStruct((b, s, h), jnp.float32),
        grid_spec=grid_spec,
        compiler_params=pltpu.CompilerParams(
            dimension_semantics=("parallel", "parallel"),
        ),
    )(ids, tok_tab, tt3, type_tab, pos_slice, gamma, beta)


def bert_embedding_reference(input_ids, token_type_ids, params):
    """Pure-JAX reference matching the PyTorch module (eval mode)."""
    s = input_ids.shape[1]
    tok = params["token_embedding"][input_ids]
    typ = params["token_type_embedding"][token_type_ids]
    pos = params["pos_embedding"][jnp.arange(s)][None, :, :]
    x = tok + typ + pos
    mean = x.mean(-1, keepdims=True)
    var = x.var(-1, keepdims=True)          # biased, like torch LayerNorm
    x_hat = (x - mean) / jnp.sqrt(var + 1e-5)
    return x_hat * params["ln_gamma"] + params["ln_beta"]


def init_params(key, vocab_size, hidden_size, max_position_embeddings,
                type_vocab_size):
    k_tok, k_pos, k_type = jax.random.split(key, 3)
    # nn.Embedding default init ~ N(0, 1); LayerNorm: gamma=1, beta=0.
    return {
        "token_embedding": jax.random.normal(
            k_tok, (vocab_size, hidden_size), jnp.float32),
        "pos_embedding": jax.random.normal(
            k_pos, (max_position_embeddings, hidden_size), jnp.float32),
        "token_type_embedding": jax.random.normal(
            k_type, (type_vocab_size, hidden_size), jnp.float32),
        "ln_gamma": jnp.ones((hidden_size,), jnp.float32),
        "ln_beta": jnp.zeros((hidden_size,), jnp.float32),
    }


if __name__ == "__main__":
    # Small shapes consistent with the module's forward.
    B, S, H = 2, 8, 32
    VOCAB, TYPE_VOCAB, MAX_POS = 64, 2, 16
    DROPOUT = 0.1  # identity at inference

    key = jax.random.PRNGKey(0)
    k_params, k_ids, k_types = jax.random.split(key, 3)

    params = init_params(k_params, VOCAB, H, MAX_POS, TYPE_VOCAB)
    input_ids = jax.random.randint(k_ids, (B, S), 0, VOCAB, dtype=jnp.int32)
    token_type_ids = jax.random.randint(
        k_types, (B, S), 0, TYPE_VOCAB, dtype=jnp.int32)

    out = bert_embedding_forward(input_ids, token_type_ids, params)
    jax.block_until_ready(out)

    ref = bert_embedding_reference(input_ids, token_type_ids, params)
    assert out.shape == (B, S, H) and out.dtype == jnp.float32
    assert jnp.allclose(out, ref, atol=1e-4, rtol=1e-4), (
        float(jnp.max(jnp.abs(out - ref))))
    print("KERNEL_OK")
</pallas_src>

<mosaic_0001>
module attributes {stable_mosaic.version = 11 : i64} {
  func.func @_bert_embedding_kernel(%arg0: i32, %arg1: i32, %arg2: memref<2x8xi32, #tpu.memory_space<smem>>, %arg3: memref<64x32xf32, #tpu.memory_space<any>>, %arg4: memref<1x8x1xi32, #tpu.memory_space<vmem>>, %arg5: memref<2x32xf32, #tpu.memory_space<vmem>>, %arg6: memref<8x32xf32, #tpu.memory_space<vmem>>, %arg7: memref<1x32xf32, #tpu.memory_space<vmem>>, %arg8: memref<1x32xf32, #tpu.memory_space<vmem>>, %arg9: memref<1x8x32xf32, #tpu.memory_space<vmem>>, %arg10: memref<8x32xf32, #tpu.memory_space<vmem>>, %arg11: memref<8x!tpu.dma_semaphore, #tpu.memory_space<semaphore_mem>>) attributes {dimension_semantics = [#tpu.dimension_semantics<parallel>, #tpu.dimension_semantics<parallel>], iteration_bounds = array<i64: 2, 1>, scalar_prefetch = 1 : i64, scratch_operands = 2 : i64, tpu.core_type = #tpu.core_type<tc>, window_params = [{}, {transform_indices = @transform_1, window_bounds = array<i64: 1, 8, 1>}, {pipeline_mode = #tpu.pipeline_mode<synchronous>, transform_indices = @transform_2, window_bounds = array<i64: 2, 32>}, {transform_indices = @transform_3, window_bounds = array<i64: 8, 32>}, {pipeline_mode = #tpu.pipeline_mode<synchronous>, transform_indices = @transform_4, window_bounds = array<i64: 1, 32>}, {pipeline_mode = #tpu.pipeline_mode<synchronous>, transform_indices = @transform_5, window_bounds = array<i64: 1, 32>}, {transform_indices = @transform_6, window_bounds = array<i64: 1, 8, 32>}]} {
    %c8_i32 = arith.constant 8 : i32
    %0 = arith.muli %arg1, %c8_i32 : i32
    %c0_i32 = arith.constant 0 : i32
    %c8_i32_0 = arith.constant 8 : i32
    %1 = arith.addi %c0_i32, %c8_i32_0 : i32
    %c1_i32 = arith.constant 1 : i32
    scf.for %arg12 = %c0_i32 to %1 step %c1_i32  : i32 {
      %c1_i32_29 = arith.constant 1 : i32
      %53 = arith.muli %arg12, %c1_i32_29 : i32
      %c0_i32_30 = arith.constant 0 : i32
      %54 = arith.addi %c0_i32_30, %53 : i32
      %55 = arith.addi %0, %54 : i32
      %56 = arith.index_cast %arg0 : i32 to index
      %57 = arith.index_cast %55 : i32 to index
      %58 = memref.load %arg2[%56, %57] : memref<2x8xi32, #tpu.memory_space<smem>>
      %c0_i32_31 = arith.constant 0 : i32
      %59 = tpu.memref_slice %arg3[%58, %c0_i32_31] : memref<64x32xf32, #tpu.memory_space<any>> -> memref<1x32xf32, #tpu.memory_space<any>>
      %c0_i32_32 = arith.constant 0 : i32
      %60 = tpu.memref_slice %arg10[%54, %c0_i32_32] : memref<8x32xf32, #tpu.memory_space<vmem>> -> memref<1x32xf32, #tpu.memory_space<vmem>>
      %61 = tpu.memref_slice %arg11[%54] : memref<8x!tpu.dma_semaphore, #tpu.memory_space<semaphore_mem>> -> memref<1x!tpu.dma_semaphore, #tpu.memory_space<semaphore_mem>>
      %62 = tpu.memref_squeeze %61 : memref<1x!tpu.dma_semaphore, #tpu.memory_space<semaphore_mem>> -> memref<!tpu.dma_semaphore, #tpu.memory_space<semaphore_mem>>
      tpu.enqueue_dma source(%59 : memref<1x32xf32, #tpu.memory_space<any>>) target(%60 : memref<1x32xf32, #tpu.memory_space<vmem>>) target_semaphore(%62 : memref<!tpu.dma_semaphore, #tpu.memory_space<semaphore_mem>>)
    }
    %c8_i32_1 = arith.constant 8 : i32
    %c0_i32_2 = arith.constant 0 : i32
    %c8_i32_3 = arith.constant 8 : i32
    %2 = arith.addi %c0_i32_2, %c8_i32_3 : i32
    %c1_i32_4 = arith.constant 1 : i32
    scf.for %arg12 = %c0_i32_2 to %2 step %c1_i32_4  : i32 {
      %c1_i32_29 = arith.constant 1 : i32
      %53 = arith.muli %arg12, %c1_i32_29 : i32
      %c0_i32_30 = arith.constant 0 : i32
      %54 = arith.addi %c0_i32_30, %53 : i32
      %c0_i32_31 = arith.constant 0 : i32
      %c0_i32_32 = arith.constant 0 : i32
      %55 = tpu.memref_slice %arg3[%c0_i32_31, %c0_i32_32] : memref<64x32xf32, #tpu.memory_space<any>> -> memref<1x32xf32, #tpu.memory_space<any>>
      %c0_i32_33 = arith.constant 0 : i32
      %56 = tpu.memref_slice %arg10[%54, %c0_i32_33] : memref<8x32xf32, #tpu.memory_space<vmem>> -> memref<1x32xf32, #tpu.memory_space<vmem>>
      %57 = tpu.memref_slice %arg11[%54] : memref<8x!tpu.dma_semaphore, #tpu.memory_space<semaphore_mem>> -> memref<1x!tpu.dma_semaphore, #tpu.memory_space<semaphore_mem>>
      %58 = tpu.memref_squeeze %57 : memref<1x!tpu.dma_semaphore, #tpu.memory_space<semaphore_mem>> -> memref<!tpu.dma_semaphore, #tpu.memory_space<semaphore_mem>>
      tpu.wait_dma2 semaphore(%58 : memref<!tpu.dma_semaphore, #tpu.memory_space<semaphore_mem>>) src(%55 : memref<1x32xf32, #tpu.memory_space<any>>) dst(%56 : memref<1x32xf32, #tpu.memory_space<vmem>>)
    }
    %c8_i32_5 = arith.constant 8 : i32
    %c0 = arith.constant 0 : index
    %c0_6 = arith.constant 0 : index
    %3 = vector.load %arg10[%c0, %c0_6] : memref<8x32xf32, #tpu.memory_space<vmem>>, vector<8x32xf32>
    %c0_7 = arith.constant 0 : index
    %c0_8 = arith.constant 0 : index
    %c0_9 = arith.constant 0 : index
    %4 = vector.load %arg4[%c0_7, %c0_8, %c0_9] : memref<1x8x1xi32, #tpu.memory_space<vmem>>, vector<1x8x1xi32>
    %5 = vector.shape_cast %4 : vector<1x8x1xi32> to vector<8x1xi32>
    %cst = arith.constant 0.000000e+00 : f32
    %6 = vector.broadcast %cst : f32 to vector<8x32xf32>
    %c0_10 = arith.constant 0 : index
    %c0_11 = arith.constant 0 : index
    %7 = vector.load %arg5[%c0_10, %c0_11] : memref<2x32xf32, #tpu.memory_space<vmem>>, vector<1x32xf32>
    %c0_i32_12 = arith.constant 0 : i32
    %8 = vector.broadcast %c0_i32_12 : i32 to vector<8x1xi32>
    %9 = arith.cmpi eq, %5, %8 : vector<8x1xi32>
    %10 = vector.shape_cast %9 : vector<8x1xi1> to vector<8x1xi1>
    %11 = vector.broadcast %10 : vector<8x1xi1> to vector<8x32xi1>
    %12 = vector.shape_cast %7 : vector<1x32xf32> to vector<1x32xf32>
    %13 = vector.broadcast %12 : vector<1x32xf32> to vector<8x32xf32>
    %14 = arith.select %11, %13, %6 : vector<8x32xi1>, vector<8x32xf32>
    %c1 = arith.constant 1 : index
    %c0_13 = arith.constant 0 : index
    %15 = vector.load %arg5[%c1, %c0_13] : memref<2x32xf32, #tpu.memory_space<vmem>>, vector<1x32xf32>
    %c1_i32_14 = arith.constant 1 : i32
    %16 = vector.broadcast %c1_i32_14 : i32 to vector<8x1xi32>
    %17 = arith.cmpi eq, %5, %16 : vector<8x1xi32>
    %18 = vector.shape_cast %17 : vector<8x1xi1> to vector<8x1xi1>
    %19 = vector.broadcast %18 : vector<8x1xi1> to vector<8x32xi1>
    %20 = vector.shape_cast %15 : vector<1x32xf32> to vector<1x32xf32>
    %21 = vector.broadcast %20 : vector<1x32xf32> to vector<8x32xf32>
    %22 = arith.select %19, %21, %14 : vector<8x32xi1>, vector<8x32xf32>
    %23 = arith.addf %3, %22 : vector<8x32xf32>
    %c0_15 = arith.constant 0 : index
    %c0_16 = arith.constant 0 : index
    %24 = vector.load %arg6[%c0_15, %c0_16] : memref<8x32xf32, #tpu.memory_space<vmem>>, vector<8x32xf32>
    %25 = arith.addf %23, %24 : vector<8x32xf32>
    %cst_17 = arith.constant dense<0.000000e+00> : vector<8xf32>
    %26 = vector.multi_reduction <add>, %25, %cst_17 [1] : vector<8x32xf32> to vector<8xf32>
    %27 = vector.shape_cast %26 : vector<8xf32> to vector<8x1xf32>
    %28 = arith.mulf %25, %25 : vector<8x32xf32>
    %cst_18 = arith.constant dense<0.000000e+00> : vector<8xf32>
    %29 = vector.multi_reduction <add>, %28, %cst_18 [1] : vector<8x32xf32> to vector<8xf32>
    %30 = vector.shape_cast %29 : vector<8xf32> to vector<8x1xf32>
    %cst_19 = arith.constant 3.125000e-02 : f32
    %31 = vector.broadcast %cst_19 : f32 to vector<8x1xf32>
    %32 = arith.mulf %27, %31 : vector<8x1xf32>
    %cst_20 = arith.constant 3.125000e-02 : f32
    %33 = vector.broadcast %cst_20 : f32 to vector<8x1xf32>
    %34 = arith.mulf %30, %33 : vector<8x1xf32>
    %35 = arith.mulf %32, %32 : vector<8x1xf32>
    %36 = arith.subf %34, %35 : vector<8x1xf32>
    %37 = vector.broadcast %32 : vector<8x1xf32> to vector<8x32xf32>
    %38 = arith.subf %25, %37 : vector<8x32xf32>
    %cst_21 = arith.constant 9.99999974E-6 : f32
    %39 = vector.broadcast %cst_21 : f32 to vector<8x1xf32>
    %40 = arith.addf %36, %39 : vector<8x1xf32>
    %41 = math.rsqrt %40 : vector<8x1xf32>
    %42 = vector.broadcast %41 : vector<8x1xf32> to vector<8x32xf32>
    %43 = arith.mulf %38, %42 : vector<8x32xf32>
    %c0_22 = arith.constant 0 : index
    %c0_23 = arith.constant 0 : index
    %44 = vector.load %arg7[%c0_22, %c0_23] : memref<1x32xf32, #tpu.memory_space<vmem>>, vector<1x32xf32>
    %45 = vector.broadcast %44 : vector<1x32xf32> to vector<8x32xf32>
    %46 = arith.mulf %43, %45 : vector<8x32xf32>
    %c0_24 = arith.constant 0 : index
    %c0_25 = arith.constant 0 : index
    %47 = vector.load %arg8[%c0_24, %c0_25] : memref<1x32xf32, #tpu.memory_space<vmem>>, vector<1x32xf32>
    %48 = vector.broadcast %47 : vector<1x32xf32> to vector<8x32xf32>
    %49 = arith.addf %46, %48 : vector<8x32xf32>
    %c0_26 = arith.constant 0 : index
    %c0_27 = arith.constant 0 : index
    %c0_28 = arith.constant 0 : index
    %50 = vector.load %arg9[%c0_26, %c0_27, %c0_28] : memref<1x8x32xf32, #tpu.memory_space<vmem>>, vector<1x8x32xf32>
    %51 = vector.shape_cast %50 : vector<1x8x32xf32> to vector<8x32xf32>
    %52 = vector.shape_cast %49 : vector<8x32xf32> to vector<1x8x32xf32>
    tpu.vector_store %arg9[%c0_26, %c0_27, %c0_28], %52 {strides = array<i32>} : memref<1x8x32xf32, #tpu.memory_space<vmem>>, vector<1x8x32xf32>,
    return
  }
  func.func @transform_1(%arg0: i32, %arg1: i32, %arg2: memref<2x8xi32, #tpu.memory_space<smem>>) -> (i32, i32, i32) {
    %c0_i32 = arith.constant 0 : i32
    %c0_i32_0 = arith.constant 0 : i32
    return %arg0, %arg1, %c0_i32 : i32, i32, i32
  }
  func.func @transform_2(%arg0: i32, %arg1: i32, %arg2: memref<2x8xi32, #tpu.memory_space<smem>>) -> (i32, i32) {
    %c0_i32 = arith.constant 0 : i32
    %c0_i32_0 = arith.constant 0 : i32
    %c0_i32_1 = arith.constant 0 : i32
    return %c0_i32, %c0_i32_0 : i32, i32
  }
  func.func @transform_3(%arg0: i32, %arg1: i32, %arg2: memref<2x8xi32, #tpu.memory_space<smem>>) -> (i32, i32) {
    %c0_i32 = arith.constant 0 : i32
    %c0_i32_0 = arith.constant 0 : i32
    return %arg1, %c0_i32 : i32, i32
  }
  func.func @transform_4(%arg0: i32, %arg1: i32, %arg2: memref<2x8xi32, #tpu.memory_space<smem>>) -> (i32, i32) {
    %c0_i32 = arith.constant 0 : i32
    %c0_i32_0 = arith.constant 0 : i32
    %c0_i32_1 = arith.constant 0 : i32
    return %c0_i32, %c0_i32_0 : i32, i32
  }
  func.func @transform_5(%arg0: i32, %arg1: i32, %arg2: memref<2x8xi32, #tpu.memory_space<smem>>) -> (i32, i32) {
    %c0_i32 = arith.constant 0 : i32
    %c0_i32_0 = arith.constant 0 : i32
    %c0_i32_1 = arith.constant 0 : i32
    return %c0_i32, %c0_i32_0 : i32, i32
  }
  func.func @transform_6(%arg0: i32, %arg1: i32, %arg2: memref<2x8xi32, #tpu.memory_space<smem>>) -> (i32, i32, i32) {
    %c0_i32 = arith.constant 0 : i32
    %c0_i32_0 = arith.constant 0 : i32
    return %arg0, %arg1, %c0_i32 : i32, i32, i32
  }
}

</mosaic_0001>

<bundles_post_ra>
// kernel: tpu_custom_call.1
= control target key start
LH: loop header
LB: loop body
LE: loop exit
PB: predicated region body
PF: predicated region fallthrough
CT: control target
= control target key end

     0   :  { %s992_s0 = inlined_call_operand.vmem [shape: s32[2,8], index: 0, kind: input, shape index: {}]   ;;  %s993_s1 = inlined_call_operand.vmem [shape: f32[64,32], index: 1, kind: input, shape index: {}]   ;;  %s994_s2 = inlined_call_operand.vmem [shape: s32[2,8,1], index: 2, kind: input, shape index: {}]   ;;  %s995_s3 = inlined_call_operand.vmem [shape: f32[2,32], index: 3, kind: input, shape index: {}]   ;;  %s996_s4 = inlined_call_operand.vmem [shape: f32[8,32], index: 4, kind: input, shape index: {}]   ;;  %s997_s5 = inlined_call_operand.vmem [shape: f32[1,32], index: 5, kind: input, shape index: {}]   ;;  %s998_s6 = inlined_call_operand.vmem [shape: f32[1,32], index: 6, kind: input, shape index: {}]   ;;  %s999_s7 = inlined_call_operand.hbm [shape: f32[2,8,32], index: 7, kind: output, shape index: {}]  }
   0x1   :  { %s12_s26 = sshll.u32 %s992_s0, 4  ;;  %s13_s26 = int_to_ptr.vmem [resolvable:$true] %s12_s26 }
   0x2   :  { %s686_s27 = scalar_lea.vmem %s13_s26, 32  ;;  %p691_p1 = scmp.lt.s32.totalorder %s13_s26, %s13_s26 }
   0x3   :  { %p687_p0 = scmp.ne.s32.totalorder %s13_s26, %s686_s27  ;;  %p692_p2 = scmp.lt.s32.totalorder %s686_s27, %s686_s27 }
   0x5   :  { %p693_p3 = por %p692_p2, %p691_p1 }
   0x7   :  { %p694_p4 = pnand %p693_p3, %p687_p0 }
   0x9   :  { %697 = shalt.err (!%p694_p4)  }
   0xa   :  { %s798_s28 = smov [#allocation5]  }
   0xb   :  { %15 = dma.vmem_to_smem %s13_s26, 32, %s798_s28, [#allocation4] }
   0xc   :  { %758 = dma.done.wait [#allocation4], 32 }
   0xd   :  { %759 = vsyncadd [#allocation4], 4294967264 }
   0xe   :  { %17 = sfence }
   0xf   :  { %18 = vsyncpa [#allocation7], 0 }
  0x10   :  { %20 = vsyncpa [#allocation7 + $0x1], 0  ;;  %s844_s29 = smov 0   ;;  %s846_s30 = smov 0  }
  0x11   :  { %s848_s0 = smov 0   ;;  %s850_s8 = smov 0  }
  0x12   :  { %s852_s9 = smov 0   ;;  %s854_s10 = smov 0  }
  0x13 LB: > { %1003 = sst [smem:[#allocation12_spill]] %s784_s9  ;;  %s585_s11 = sadd.s32 4294967295, %s788_s10   ;;  %s788_s10 = sphi %s854_s10, %s26_s10   ;;  %s784_s9 = sphi %s852_s9, %s1009_s9   ;;  %s780_s8 = sphi %s850_s8, %s1008_s8   ;;  %s776_s0 = sphi %s848_s0, %s1012_s0   ;;  %s772_s30 = sphi %s846_s30, %s1011_s30   ;;  %s768_s29 = sphi %s844_s29, %s1010_s29  }
  0x14   : > { %s586_s12 = sadd.s32 4294967294, %s788_s10   ;;  %s38_s13 = sadd.s32 1, %s784_s9 }
  0x15   : > { %s164_s14 = sadd.s32 1, %s776_s0  ;;  %p40_p5 = scmp.ge.s32.totalorder %s38_s13, 2 }
  0x16   : > { %p174_p6 = scmp.ne.s32.totalorder %s776_s0, %s772_s30  ;;  %p175_p7 = scmp.eq.s32.totalorder %s585_s11, 1 }
  0x17   : > { %p180_p8 = scmp.ne.s32.totalorder %s772_s30, %s768_s29  ;;  %s1014_s13 = smov (%p40_p5, %s38_s13), 0 }
  0x18   : > { %1004 = sst [smem:[#allocation13_spill]] %s1014_s13  ;;  %p884_p9 = por %p175_p7, %p174_p6 }
  0x19   : > { %p181_p10 = scmp.eq.s32.totalorder %s586_s12, 1  ;;  %s159_s16 = ssub.s32 %s784_s9, %s1014_s13 }
  0x1a   : > { %p590_p11 = scmp.ge.s32.totalorder %s788_s10, 1  ;;  %p162_p12 = scmp.eq.s32.totalorder %s159_s16, 0 }
  0x1b   : > { %p891_p13 = por %p181_p10, %p180_p8  ;;  %p225_p0 = scmp.lt.s32.totalorder %s788_s10, 3 }
  0x1c   : > { %s897_s18 = scalar_select %p162_p12, %s776_s0, %s164_s14  }
  0x1d   : > { %p226_p1 = pnand %p590_p11, %p225_p0 }
  0x1e   : > { %s1000_s19 = sand.u32 (!%p226_p1), 1, %s772_s30   ;;  %p259_p2 = scmp.lt.s32.totalorder (!%p226_p1), %s780_s8, 1 }
  0x1f   : > { %229 = sbr.rel (%p226_p1) target bundleno = 394 (0x18a), region = 40  ;;  %s903_s20 = sshll.u32 (!%p226_p1), %s1000_s19, 3 }
  0x20   : > { %s258_s26 = scalar_lea.vmem (!%p226_p1), [#allocation6], %s903_s20  ;;  %s790_s27 = smov (!%p226_p1), 0  }
  0x26   : > { %s260_s21 = scalar_select %p259_p2, %s780_s8, 1 }
  0x28   : > { %s592_s22 = sshll.u32 %s260_s21, 3 }
  0x29   : > { %s909_s25 = scalar_lea.vmem %s994_s2, %s592_s22 }
  0x2a LB: >> { %s278_s28 = sshra.s32 %s792_s27, 7  ;;  %s283_s11 = sand.u32 127, %s792_s27  ;;  %s792_s27 = sphi %s790_s27, %s276_s27  }
  0x2b   : >> { %s280_s12 = sadd.s32 %s780_s8, %s278_s28  ;;  %s287_s23 = scalar_lea.vmem [#allocation2], %s792_s27 }
  0x2c   : >> { %s593_s14 = sshll.u32 %s280_s12, 7  ;;  %s288_s22 = scalar_lea.sflag [#allocation3], %s792_s27 }
  0x2d   : >> { %s284_s16 = sadd.s32 %s593_s14, %s283_s11 }
  0x2e   : >> { %s285_s19 = sld [smem:[#allocation5 + %s284_s16]] }
  0x34   : >> { %s286_s21 = scalar_lea.vmem %s993_s1, %s285_s19 }
  0x35   : >> { %v306_v0 = vld [vmem:[%s286_s21] sm:$0x1] }
  0x36   : >> { %307 = vst [vmem:[%s287_s23] sm:$0x1] %v306_v0 }
  0x37   : >> { %332 = vsyncadd %s288_s22, 16  ;;  %s276_s27 = sadd.s32 1, %s792_s27  }
  0x38   : >> { %p273_p3 = scmp.ge.s32.totalorder %s276_s27, 8  }
  0x39   : > { %s794_s24 = smov (%p273_p3), 0  }
  0x3a   : > { %275 = sbr.rel (!%p273_p3) target bundleno = 42 (0x2a), region = 143 }
  0x41 LB: >> { %s339_s28 = scalar_lea.sflag [#allocation3], %s796_s24  ;;  %s796_s24 = sphi %s794_s24, %s338_s24  }
  0x42   : >> { %760 = dma.done.wait %s339_s28, 16 }
  0x43   : >> { %761 = vsyncadd %s339_s28, 4294967280  ;;  %s338_s24 = sadd.s32 1, %s796_s24  }
  0x44   : >> { %p335_p4 = scmp.ge.s32.totalorder %s338_s24, 8  }
  0x45   : > { %v344_v1 = vld [vmem:[%s909_s25] sm:$0xff] (%p335_p4)  ;;  %v799_v2 = vmov (%p335_p4), 0   ;;  %vm372_vm4 = vcmask (%p335_p4), 261120   ;;  %s599_s23 = sshll.u32 (%p335_p4), %s780_s8, 7  ;;  %s420_s22 = sshll.u32 (%p335_p4), %s258_s26, 4  ;;  %s942_s22 = int_to_ptr.vmem [resolvable:$true] %s420_s22 }
  0x46   : > { %337 = sbr.rel (!%p335_p4) target bundleno = 65 (0x41), region = 154  ;;  %683 = vset.pattern.permute.xlu0 (%p335_p4), %v799_v2  ;;  %vm346_vm0 = vcmp.eq.s32.totalorder (%p335_p4), %v344_v1, 0  ;;  %vm358_vm1 = vcmp.eq.s32.totalorder (%p335_p4), %v344_v1, 1  ;;  %v594_v6 = vld [vmem:[%s995_s3] ss:$0 sm:$0xff] (%p335_p4)  ;;  %s940_s9 = scalar_lea.hbm (%p335_p4), %s999_s7, %s599_s23 }
  0x47   : > { %v347_v3 = vsel (%p335_p4), %vm346_vm0, 1, %v799_v2  ;;  %v359_v4 = vsel (%p335_p4), %vm358_vm1, 1, %v799_v2  ;;  %v595_v7 = vld [vmem:[%s995_s3 + $0x1] ss:$0 sm:$0xff] (%p335_p4)  ;;  %v596_v27 = vld [vmem:[%s997_s5] ss:$0 sm:$0xff] (%p335_p4) }
  0x48   : > { %349 = vperm.xlu0 (%p335_p4), %683, %v347_v3   ;;  %v343_v9 = vld [vmem:[#allocation2] sm:$0xff] (%p335_p4)  ;;  %s1007_s13 = sand.u32 (%p335_p4), 1, %s772_s30   ;;  %s698_s8 = scalar_lea.vmem (%p335_p4), %s942_s22, 128 }
  0x49   : > { %v370_v12 = vld [vmem:[%s996_s4] sm:$0xff] (%p335_p4)  ;;  %s406_s19 = scalar_lea.sflag (%p335_p4), [#allocation7], %s1007_s13  ;;  %p699_p5 = scmp.ne.s32.totalorder (%p335_p4), %s942_s22, %s698_s8 }
  0x4a   : > { %v597_v29 = vld [vmem:[%s998_s6] ss:$0 sm:$0xff] (%p335_p4)  ;;  %s800_s27 = smov (%p335_p4), [#allocation6]  }
  0x4b   : > { %p700_p6 = pnand (%p335_p4), %p699_p5, %p884_p9  ;;  %s702_s25 = sshll.u32 (%p335_p4), %s800_s27, 4  ;;  %s703_s25 = int_to_ptr.vmem [resolvable:$false] %s702_s25 }
  0x4c   : > { %361 = vperm.xlu0 (%p335_p4), %683, %v359_v4   ;;  %s704_s11 = scalar_lea.vmem (%p335_p4), %s703_s25, 256  ;;  %p705_p8 = scmp.lt.s32.totalorder (%p335_p4), %s942_s22, %s703_s25 }
  0x4d   : > { %p701_p7 = pneg %p700_p6  ;;  %p706_p10 = scmp.lt.s32.totalorder %s704_s11, %s698_s8 }
  0x4f   : > { %p707_p11 = por %p706_p10, %p705_p8 }
  0x51   : > { %p708_p12 = pnand %p707_p11, %p701_p7 }
  0xc7   : > { %v350_v5 = vpop.permute.xlu0 %349 }
  0xc8   : > { %vm351_vm2 = vcmp.eq.s32.totalorder %v350_v5, 1 }
  0xc9   : > { %v356_v10 = vsel %vm351_vm2, %v594_v6, 0.0 }
  0xcb   : > { %v362_v8 = vpop.permute.xlu0 %361 }
  0xcc   : > { %vm363_vm3 = vcmp.eq.s32.totalorder %v362_v8, 1 }
  0xcd   : > { %v368_v11 = vsel %vm363_vm3, %v595_v7, %v356_v10 }
  0xce   : > { %v369_v13 = vadd.f32 %v368_v11, %v343_v9 }
  0xd0   : > { %v371_v14 = vadd.f32 %v370_v12, %v369_v13 }
  0xd2   : > { %v373_v15 = vsel %vm372_vm4, %v371_v14, 0.0  ;;  %v376_v16 = vmul.f32 %v371_v14, %v371_v14 }
  0xd3   : > { %374 = vadd.xlane.f32.xlu1 %v373_v15 }
  0xd4   : > { %v377_v17 = vsel %vm372_vm4, %v376_v16, 0.0 }
  0xd7   : > { %378 = vadd.xlane.f32.xlu1 %v377_v17 }
 0x160   : > { %v375_v18 = vpop.xlane.xlu1 %374 }
 0x161   : > { %v380_v19 = vmul.f32 0.03125, %v375_v18 }
 0x163   : > { %v382_v21 = vmul.f32 %v380_v19, %v380_v19  ;;  %v384_v25 = vsub.f32 %v371_v14, %v380_v19 }
 0x164   : > { %v379_v20 = vpop.xlane.xlu1 %378 }
 0x165   : > { %v381_v22 = vmul.f32 0.03125, %v379_v20 }
 0x167   : > { %v383_v23 = vsub.f32 %v381_v22, %v382_v21 }
 0x169   : > { %v385_v24 = vadd.f32 1e-05, %v383_v23 }
 0x16b   : > { %684 = vrsqrt.f32 %v385_v24 }
 0x175   : > { %v685_v26 = vpop.eup %684 }
 0x176   : > { %v387_v28 = vmul.f32 %v685_v26, %v384_v25 }
 0x178   : > { %v395_v30 = vmul.f32 %v596_v27, %v387_v28 }
 0x17a   : > { %v403_v31 = vadd.f32 %v597_v29, %v395_v30 }
 0x17c   : > { %404 = vst.msk [vmem:[%s258_s26] sm:$0xff] %vm372_vm4, %v403_v31 }
 0x17d   : > { %711 = shalt.err (!%p708_p12)
}
 0x17e   : > { %s712_s20 = scalar_lea.hbm %s940_s9, 128  ;;  %s716_s14 = scalar_lea.hbm %s999_s7, 256 }
 0x17f   : > { %p713_p0 = scmp.ne.s32.totalorder %s940_s9, %s712_s20  ;;  %p717_p3 = scmp.lt.u32.totalorder %s940_s9, %s999_s7 }
 0x180   : > { %p718_p4 = scmp.lt.u32.totalorder %s716_s14, %s712_s20  ;;  %p720_p6 = scmp.lt.u32.totalorder %s712_s20, %s940_s9 }
 0x181   : > { %p714_p1 = pnand %p713_p0, %p884_p9 }
 0x182   : > { %p719_p5 = por %p718_p4, %p717_p3 }
 0x183   : > { %p715_p2 = pneg %p714_p1 }
 0x184   : > { %p721_p7 = por %p720_p6, %p719_p5 }
 0x186   : > { %p722_p8 = pnand %p721_p7, %p715_p2 }
 0x188   : > { %725 = shalt.err (!%p722_p8)
}
 0x189   : > { %610 = dma.vmem_to_hbm [thread:$0]  (%p884_p9), %s942_s22, 128, %s940_s9, %s406_s19  }
 0x18a PF: > { %p616_p10 = scmp.ge.s32.totalorder %s788_s10, 2  ;;  %s432_s23 = sand.u32 1, %s768_s29  }
 0x18b   : > { %s433_s24 = scalar_lea.sflag [#allocation7], %s432_s23 }
 0x18c   : > { %p613_p11 = pnand %p616_p10, %p891_p13 }
 0x18e   : > { %763 = dma.done.wait (!%p613_p11), %s433_s24, 128  }
 0x18f   : > { %765 = vsyncadd (!%p613_p11), %s433_s24, 4294967168  ;;  %s26_s10 = sadd.s32 1, %s788_s10   ;;  %s1008_s8 = sld [smem:[#allocation12_spill]] }
 0x190   : > { %p23_p12 = scmp.ge.s32.totalorder %s26_s10, 4   ;;  %s1009_s9 = sld [smem:[#allocation13_spill]] }
 0x191   : > { %s1010_s29 = smov %s772_s30  ;;  %s1011_s30 = smov %s776_s0 }
 0x192   : > { %s1012_s0 = smov %s897_s18  ;;  %25 = sbr.rel (!%p23_p12) target bundleno = 19 (0x13), region = 165 }
 0x199   :  { %438 = vsyncpa [#allocation7], 1 }
 0x19a   :  { %440 = vsyncpa [#allocation7 + $0x1], 1 }
 0x19b   :  { %441 = vsyncmov [#allocation3] }
 0x19e   :  { %s442_s15 = vpop.sfrf %441 }
 0x19f   :  { %p602_p9 = scmp.ne.s32.totalorder %s442_s15, 0 }
 0x1a1   :  { %446 = shalt.err (%p602_p9)  }
 0x1a2   :  { %448 = vsyncmov [#allocation3 + $0x1] }
 0x1a5   :  { %s449_s17 = vpop.sfrf %448 }
 0x1a6   :  { %p603_p13 = scmp.ne.s32.totalorder %s449_s17, 0 }
 0x1a8   :  { %453 = shalt.err (%p603_p13)  }
 0x1a9   :  { %455 = vsyncmov [#allocation3 + $0x2] }
 0x1ac   :  { %s456_s22 = vpop.sfrf %455 }
 0x1ad   :  { %p604_p0 = scmp.ne.s32.totalorder %s456_s22, 0 }
 0x1af   :  { %460 = shalt.err (%p604_p0)  }
 0x1b0   :  { %462 = vsyncmov [#allocation3 + $0x3] }
 0x1b3   :  { %s463_s18 = vpop.sfrf %462 }
 0x1b4   :  { %p605_p1 = scmp.ne.s32.totalorder %s463_s18, 0 }
 0x1b6   :  { %467 = shalt.err (%p605_p1)  }
 0x1b7   :  { %469 = vsyncmov [#allocation3 + $0x4] }
 0x1ba   :  { %s470_s10 = vpop.sfrf %469 }
 0x1bb   :  { %p606_p2 = scmp.ne.s32.totalorder %s470_s10, 0 }
 0x1bd   :  { %474 = shalt.err (%p606_p2)  }
 0x1be   :  { %476 = vsyncmov [#allocation3 + $0x5] }
 0x1c1   :  { %s477_s1 = vpop.sfrf %476 }
 0x1c2   :  { %p607_p3 = scmp.ne.s32.totalorder %s477_s1, 0 }
 0x1c4   :  { %481 = shalt.err (%p607_p3)  }
 0x1c5   :  { %483 = vsyncmov [#allocation3 + $0x6] }
 0x1c8   :  { %s484_s2 = vpop.sfrf %483 }
 0x1c9   :  { %p608_p4 = scmp.ne.s32.totalorder %s484_s2, 0 }
 0x1cb   :  { %488 = shalt.err (%p608_p4)  }
 0x1cc   :  { %490 = vsyncmov [#allocation3 + $0x7] }
 0x1cf   :  { %s491_s3 = vpop.sfrf %490 }
 0x1d0   :  { %p609_p5 = scmp.ne.s32.totalorder %s491_s3, 0 }
 0x1d2   :  { %495 = shalt.err (%p609_p5)  }

</bundles_post_ra>
